<compile_context>
chip_gen: v7x
topology: tpu7x:2x2x1
jax: 0.10.0
libtpu: 0.0.40
codegen_flags: <defaults>
</compile_context>

<pallas_src>
import functools
import math

import jax
import jax.numpy as jnp
from jax import lax
from jax.experimental import pallas as pl
from jax.experimental.pallas import tpu as pltpu

NEG_SLOPE = 0.2  # LeakyReLU slope assumed for the FILM `Conv2d` helper.


def _largest_divisor_leq(n, cap):
    cap = max(1, min(n, int(cap)))
    for d in range(cap, 0, -1):
        if n % d == 0:
            return d
    return 1


# ----------------------------------------------------------------------------
# Pallas kernels
# ----------------------------------------------------------------------------
def _conv3x3_leaky_kernel(win_ref, w_ref, b_ref, o_ref, *, wp):
    """3x3 'same' conv + bias + LeakyReLU on one halo'd row tile.

    win_ref: (1, 1, (TH+3)*wp, Cin)  bf16  flattened-spatial window (rows of width
                                           wp = W+2, incl. 2 halo rows + 1 guard row)
    w_ref:   (9*Cin, Cout)           bf16  VMEM-resident across the whole grid
    b_ref:   (1, Cout)               f32
    o_ref:   (1, 1, TH*wp, Cout)     bf16  (columns W..W+1 of every row are garbage
                                           and get dropped by the wrapper)
    """
    m = o_ref.shape[2]                              # TH * wp
    taps = []
    for dy in range(3):
        for dx in range(3):
            off = dy * wp + dx                      # static sublane offset
            taps.append(win_ref[0, 0, off:off + m, :])
    # Single lane-dense K = 9*Cin contraction -> all accumulation stays in the MXU.
    lhs = jnp.concatenate(taps, axis=-1)            # (M, 9*Cin) bf16
    acc = jnp.dot(lhs, w_ref[...], preferred_element_type=jnp.float32)
    acc = acc + b_ref[...]                          # bias in f32
    acc = jnp.where(acc >= 0, acc, NEG_SLOPE * acc)  # LeakyReLU in f32
    o_ref[0, 0] = acc.astype(o_ref.dtype)


def _avgpool2x2_kernel(x_ref, o_ref, *, c):
    """2x2/stride-2 average pool on a row tile; pure VPU (no matmul).

    x_ref: (1, THo, 2*Wo, 2*C)  -- h-parity folded into the sublane dim halves,
                                   w-parity folded into the lane dim halves.
    o_ref: (1, THo, Wo, C)
    """
    wo = o_ref.shape[2]
    x = x_ref[0].astype(jnp.float32)
    s = x[:, :wo, :] + x[:, wo:, :]                 # sum over h-parity
    o = 0.25 * (s[:, :, :c] + s[:, :, c:])          # sum over w-parity
    o_ref[0] = o.astype(o_ref.dtype)


# ----------------------------------------------------------------------------
# Wrappers (padding / layout glue in XLA, compute in Pallas)
# ----------------------------------------------------------------------------
def conv3x3_leaky(x, w, bias, *, max_tile_h=None, out_dtype=jnp.bfloat16):
    """3x3 'same' conv + bias + LeakyReLU(0.2).

    x: (B, H, W, Cin); w: (3, 3, Cin, Cout) f32; bias: (Cout,) f32.
    Returns (B, H, W, Cout) in `out_dtype` (bf16 by default).
    """
    b, h, wd, cin = x.shape
    cout = w.shape[-1]
    wp = wd + 2                                    # padded row stride

    # Row-tile height: largest divisor of H whose halo'd bf16 window fits a budget.
    if max_tile_h is None:
        budget = 4 * 1024 * 1024
        max_tile_h = max(1, budget // max(1, wp * cin * 2))
    th = _largest_divisor_leq(h, max_tile_h)
    n_tiles = h // th
    span = (th + 3) * wp                           # tile rows + 2 halo rows + 1 guard row
    m = th * wp                                    # matmul M per grid step

    # Pad (1 top, 1 bottom + 1 guard row; 1 col each side), flatten (H, W) so every
    # 3x3 tap of a row tile is ONE contiguous 2-D slab (no in-kernel reshape).
    xp = jnp.pad(x.astype(jnp.bfloat16), ((0, 0), (1, 2), (1, 1), (0, 0)))
    xflat = xp.reshape(b, (h + 3) * wp, cin)
    # Overlapping halo'd windows (~(TH+3)/TH duplication instead of the 9x im2col).
    wins = jnp.stack(
        [lax.slice_in_dim(xflat, r * th * wp, r * th * wp + span, axis=1)
         for r in range(n_tiles)], axis=1)         # (B, n_tiles, span, Cin)

    w9 = w.reshape(9 * cin, cout).astype(jnp.bfloat16)   # K = 9*Cin, bf16
    b2 = bias.reshape(1, cout).astype(jnp.float32)

    out = pl.pallas_call(
        functools.partial(_conv3x3_leaky_kernel, wp=wp),
        out_shape=jax.ShapeDtypeStruct((b, n_tiles, m, cout), out_dtype),
        grid=(b, n_tiles),
        in_specs=[
            pl.BlockSpec((1, 1, span, cin), lambda i, j: (i, j, 0, 0)),
            pl.BlockSpec((9 * cin, cout), lambda i, j: (0, 0)),   # stays resident
            pl.BlockSpec((1, cout), lambda i, j: (0, 0)),         # stays resident
        ],
        out_specs=pl.BlockSpec((1, 1, m, cout), lambda i, j: (i, j, 0, 0)),
        compiler_params=pltpu.CompilerParams(
            dimension_semantics=("parallel", "parallel"),
            vmem_limit_bytes=32 * 1024 * 1024),
    )(wins, w9, b2)

    # (B, n_tiles, TH*Wp, Cout) -> (B, H, Wp, Cout) -> drop the 2 garbage columns.
    return out.reshape(b, h, wp, cout)[:, :, :wd, :]


def avg_pool2x2(x, *, max_tile_h=None, out_dtype=jnp.bfloat16):
    """2x2 average pool, stride 2 (H, W even). x: (B, H, W, C)."""
    b, h, wd, c = x.shape
    ho, wo = h // 2, wd // 2
    # Fold the 2x2 window into (sublane, lane) halves: (B,H,W,C) -> (B,Ho,2*Wo,2*C).
    xr = x.astype(jnp.bfloat16).reshape(b, ho, 2 * wo, 2 * c)

    if max_tile_h is None:
        budget = 4 * 1024 * 1024
        max_tile_h = max(1, budget // max(1, 2 * wo * 2 * c * 2))
    tho = _largest_divisor_leq(ho, max_tile_h)
    n_tiles = ho // tho

    return pl.pallas_call(
        functools.partial(_avgpool2x2_kernel, c=c),
        out_shape=jax.ShapeDtypeStruct((b, ho, wo, c), out_dtype),
        grid=(b, n_tiles),
        in_specs=[pl.BlockSpec((1, tho, 2 * wo, 2 * c), lambda i, j: (i, j, 0, 0))],
        out_specs=pl.BlockSpec((1, tho, wo, c), lambda i, j: (i, j, 0, 0)),
        compiler_params=pltpu.CompilerParams(
            dimension_semantics=("parallel", "parallel"),
            vmem_limit_bytes=32 * 1024 * 1024),
    )(xr)


# ----------------------------------------------------------------------------
# SubTreeExtractor
# ----------------------------------------------------------------------------
class SubTreeExtractorPallas:
    """Pallas port of the FILM SubTreeExtractor (bf16 activations, f32 epilogues)."""

    def __init__(self, in_channels=3, channels=64, n_layers=4, key=None):
        if key is None:
            key = jax.random.PRNGKey(0)
        self.n_layers = n_layers
        self.params = []
        cin = in_channels
        for i in range(n_layers):
            cout = channels << i
            key, k1, k2, k3, k4 = jax.random.split(key, 5)
            w1 = jax.random.normal(k1, (3, 3, cin, cout), jnp.float32) / math.sqrt(9 * cin)
            b1 = 0.01 * jax.random.normal(k2, (cout,), jnp.float32)
            w2 = jax.random.normal(k3, (3, 3, cout, cout), jnp.float32) / math.sqrt(9 * cout)
            b2 = 0.01 * jax.random.normal(k4, (cout,), jnp.float32)
            self.params.append((w1, b1, w2, b2))
            cin = cout

    def __call__(self, image, n, *, max_tile_h=None):
        """image: (B, H, W, Cin) NHWC.  Returns list of n_layers feature maps (bf16)."""
        head = image
        pyramid = []
        for i in range(self.n_layers):
            w1, b1, w2, b2 = self.params[i]
            head = conv3x3_leaky(head, w1, b1, max_tile_h=max_tile_h)
            head = conv3x3_leaky(head, w2, b2, max_tile_h=max_tile_h)
            pyramid.append(head)
            if i < n - 1:
                head = avg_pool2x2(head, max_tile_h=max_tile_h)
        return pyramid


# ----------------------------------------------------------------------------
# Pure-JAX reference (f32, HIGHEST precision) for correctness check
# ----------------------------------------------------------------------------
def _reference(image, params, n):
    def conv(x, w, b):
        y = lax.conv_general_dilated(
            x, w, window_strides=(1, 1), padding="SAME",
            dimension_numbers=("NHWC", "HWIO", "NHWC"),
            precision=lax.Precision.HIGHEST) + b
        return jnp.where(y >= 0, y, NEG_SLOPE * y)

    def pool(x):
        b_, h_, w_, c_ = x.shape
        return x.reshape(b_, h_ // 2, 2, w_ // 2, 2, c_).mean(axis=(2, 4))

    head = image
    pyramid = []
    for i, (w1, b1, w2, b2) in enumerate(params):
        head = conv(conv(head, w1, b1), w2, b2)
        pyramid.append(head)
        if i < n - 1:
            head = pool(head)
    return pyramid


# ----------------------------------------------------------------------------
if __name__ == "__main__":
    key = jax.random.PRNGKey(0)
    k_img, k_par = jax.random.split(key)

    batch, height, width, in_ch = 2, 16, 16, 3
    channels, n_layers, n = 8, 4, 4

    image = jax.random.normal(k_img, (batch, height, width, in_ch), jnp.float32)

    model = SubTreeExtractorPallas(in_channels=in_ch, channels=channels,
                                   n_layers=n_layers, key=k_par)

    # max_tile_h=8 exercises the halo'd multi-row-tile path at level 0 (H=16 -> 2 tiles).
    pyramid = model(image, n, max_tile_h=8)
    pyramid = [jax.block_until_ready(p) for p in pyramid]

    ref = _reference(image, model.params, n)

    ok = True
    for lvl, (got, want) in enumerate(zip(pyramid, ref)):
        assert got.shape == want.shape, (lvl, got.shape, want.shape)
        err = float(jnp.max(jnp.abs(got.astype(jnp.float32) - want)))
        # bf16 end-to-end pipeline vs f32 HIGHEST reference -> bf16-scale tolerance.
        tol = 5e-2 + 5e-2 * float(jnp.max(jnp.abs(want)))
        if err > tol:
            ok = False
            print("level", lvl, "max abs err", err, "tol", tol)

    if ok:
        print("KERNEL_OK")
</pallas_src>

<mosaic_0001>
module attributes {stable_mosaic.version = 11 : i64} {
  func.func @_conv3x3_leaky_kernel(%arg0: i32, %arg1: i32, %arg2: memref<1x1x198x3xbf16, #tpu.memory_space<vmem>>, %arg3: memref<27x8xbf16, #tpu.memory_space<vmem>>, %arg4: memref<1x8xf32, #tpu.memory_space<vmem>>, %arg5: memref<1x1x144x8xbf16, #tpu.memory_space<vmem>>) attributes {dimension_semantics = [#tpu.dimension_semantics<parallel>, #tpu.dimension_semantics<parallel>], iteration_bounds = array<i64: 2, 2>, scalar_prefetch = 0 : i64, scratch_operands = 0 : i64, tpu.core_type = #tpu.core_type<tc>, window_params = [{transform_indices = @transform_0, window_bounds = array<i64: 1, 1, 198, 3>}, {pipeline_mode = #tpu.pipeline_mode<synchronous>, transform_indices = @transform_1, window_bounds = array<i64: 27, 8>}, {pipeline_mode = #tpu.pipeline_mode<synchronous>, transform_indices = @transform_2, window_bounds = array<i64: 1, 8>}, {transform_indices = @transform_3, window_bounds = array<i64: 1, 1, 144, 8>}]} {
    %c0 = arith.constant 0 : index
    %c0_0 = arith.constant 0 : index
    %c0_1 = arith.constant 0 : index
    %c0_2 = arith.constant 0 : index
    %0 = vector.load %arg2[%c0, %c0_0, %c0_1, %c0_2] : memref<1x1x198x3xbf16, #tpu.memory_space<vmem>>, vector<1x1x144x3xbf16>
    %1 = vector.shape_cast %0 : vector<1x1x144x3xbf16> to vector<144x3xbf16>
    %c0_3 = arith.constant 0 : index
    %c0_4 = arith.constant 0 : index
    %c1 = arith.constant 1 : index
    %c0_5 = arith.constant 0 : index
    %2 = vector.load %arg2[%c0_3, %c0_4, %c1, %c0_5] : memref<1x1x198x3xbf16, #tpu.memory_space<vmem>>, vector<1x1x144x3xbf16>
    %3 = vector.shape_cast %2 : vector<1x1x144x3xbf16> to vector<144x3xbf16>
    %c0_6 = arith.constant 0 : index
    %c0_7 = arith.constant 0 : index
    %c2 = arith.constant 2 : index
    %c0_8 = arith.constant 0 : index
    %4 = vector.load %arg2[%c0_6, %c0_7, %c2, %c0_8] : memref<1x1x198x3xbf16, #tpu.memory_space<vmem>>, vector<1x1x144x3xbf16>
    %5 = vector.shape_cast %4 : vector<1x1x144x3xbf16> to vector<144x3xbf16>
    %c0_9 = arith.constant 0 : index
    %c0_10 = arith.constant 0 : index
    %c18 = arith.constant 18 : index
    %c0_11 = arith.constant 0 : index
    %6 = vector.load %arg2[%c0_9, %c0_10, %c18, %c0_11] : memref<1x1x198x3xbf16, #tpu.memory_space<vmem>>, vector<1x1x144x3xbf16>
    %7 = vector.shape_cast %6 : vector<1x1x144x3xbf16> to vector<144x3xbf16>
    %c0_12 = arith.constant 0 : index
    %c0_13 = arith.constant 0 : index
    %c19 = arith.constant 19 : index
    %c0_14 = arith.constant 0 : index
    %8 = vector.load %arg2[%c0_12, %c0_13, %c19, %c0_14] : memref<1x1x198x3xbf16, #tpu.memory_space<vmem>>, vector<1x1x144x3xbf16>
    %9 = vector.shape_cast %8 : vector<1x1x144x3xbf16> to vector<144x3xbf16>
    %c0_15 = arith.constant 0 : index
    %c0_16 = arith.constant 0 : index
    %c20 = arith.constant 20 : index
    %c0_17 = arith.constant 0 : index
    %10 = vector.load %arg2[%c0_15, %c0_16, %c20, %c0_17] : memref<1x1x198x3xbf16, #tpu.memory_space<vmem>>, vector<1x1x144x3xbf16>
    %11 = vector.shape_cast %10 : vector<1x1x144x3xbf16> to vector<144x3xbf16>
    %c0_18 = arith.constant 0 : index
    %c0_19 = arith.constant 0 : index
    %c36 = arith.constant 36 : index
    %c0_20 = arith.constant 0 : index
    %12 = vector.load %arg2[%c0_18, %c0_19, %c36, %c0_20] : memref<1x1x198x3xbf16, #tpu.memory_space<vmem>>, vector<1x1x144x3xbf16>
    %13 = vector.shape_cast %12 : vector<1x1x144x3xbf16> to vector<144x3xbf16>
    %c0_21 = arith.constant 0 : index
    %c0_22 = arith.constant 0 : index
    %c37 = arith.constant 37 : index
    %c0_23 = arith.constant 0 : index
    %14 = vector.load %arg2[%c0_21, %c0_22, %c37, %c0_23] : memref<1x1x198x3xbf16, #tpu.memory_space<vmem>>, vector<1x1x144x3xbf16>
    %15 = vector.shape_cast %14 : vector<1x1x144x3xbf16> to vector<144x3xbf16>
    %c0_24 = arith.constant 0 : index
    %c0_25 = arith.constant 0 : index
    %c38 = arith.constant 38 : index
    %c0_26 = arith.constant 0 : index
    %16 = vector.load %arg2[%c0_24, %c0_25, %c38, %c0_26] : memref<1x1x198x3xbf16, #tpu.memory_space<vmem>>, vector<1x1x144x3xbf16>
    %17 = vector.shape_cast %16 : vector<1x1x144x3xbf16> to vector<144x3xbf16>
    %18 = tpu.concatenate %1, %3, %5, %7, %9, %11, %13, %15, %17 in 1 : vector<144x3xbf16>, vector<144x3xbf16>, vector<144x3xbf16>, vector<144x3xbf16>, vector<144x3xbf16>, vector<144x3xbf16>, vector<144x3xbf16>, vector<144x3xbf16>, vector<144x3xbf16> -> vector<144x27xbf16>
    %c0_27 = arith.constant 0 : index
    %c0_28 = arith.constant 0 : index
    %19 = vector.load %arg3[%c0_27, %c0_28] : memref<27x8xbf16, #tpu.memory_space<vmem>>, vector<27x8xbf16>
    %cst = arith.constant dense<0.000000e+00> : vector<144x8xf32>
    %20 = tpu.matmul %18, %19, %cst {dimension_numbers = #tpu.dot_dimension_numbers<[1], [0], [0], [1], [0, 0, 1, 1], [], []>} : vector<144x27xbf16>, vector<27x8xbf16>, vector<144x8xf32> -> vector<144x8xf32>
    %c0_29 = arith.constant 0 : index
    %c0_30 = arith.constant 0 : index
    %21 = vector.load %arg4[%c0_29, %c0_30] : memref<1x8xf32, #tpu.memory_space<vmem>>, vector<1x8xf32>
    %22 = vector.broadcast %21 : vector<1x8xf32> to vector<144x8xf32>
    %23 = arith.addf %20, %22 : vector<144x8xf32>
    %cst_31 = arith.constant 0.000000e+00 : f32
    %24 = vector.broadcast %cst_31 : f32 to vector<144x8xf32>
    %25 = arith.cmpf oge, %23, %24 : vector<144x8xf32>
    %cst_32 = arith.constant 2.000000e-01 : f32
    %26 = vector.broadcast %cst_32 : f32 to vector<144x8xf32>
    %27 = arith.mulf %26, %23 : vector<144x8xf32>
    %28 = arith.select %25, %23, %27 : vector<144x8xi1>, vector<144x8xf32>
    %29 = arith.truncf %28 : vector<144x8xf32> to vector<144x8xbf16>
    %c0_33 = arith.constant 0 : index
    %c0_34 = arith.constant 0 : index
    %c0_35 = arith.constant 0 : index
    %c0_36 = arith.constant 0 : index
    %30 = vector.load %arg5[%c0_33, %c0_34, %c0_35, %c0_36] : memref<1x1x144x8xbf16, #tpu.memory_space<vmem>>, vector<1x1x144x8xbf16>
    %31 = vector.shape_cast %30 : vector<1x1x144x8xbf16> to vector<144x8xbf16>
    %32 = vector.shape_cast %29 : vector<144x8xbf16> to vector<1x1x144x8xbf16>
    tpu.vector_store %arg5[%c0_33, %c0_34, %c0_35, %c0_36], %32 {strides = array<i32>} : memref<1x1x144x8xbf16, #tpu.memory_space<vmem>>, vector<1x1x144x8xbf16>,
    return
  }
  func.func @transform_0(%arg0: i32, %arg1: i32) -> (i32, i32, i32, i32) {
    %c0_i32 = arith.constant 0 : i32
    %c0_i32_0 = arith.constant 0 : i32
    %c0_i32_1 = arith.constant 0 : i32
    return %arg0, %arg1, %c0_i32, %c0_i32_0 : i32, i32, i32, i32
  }
  func.func @transform_1(%arg0: i32, %arg1: i32) -> (i32, i32) {
    %c0_i32 = arith.constant 0 : i32
    %c0_i32_0 = arith.constant 0 : i32
    %c0_i32_1 = arith.constant 0 : i32
    return %c0_i32, %c0_i32_0 : i32, i32
  }
  func.func @transform_2(%arg0: i32, %arg1: i32) -> (i32, i32) {
    %c0_i32 = arith.constant 0 : i32
    %c0_i32_0 = arith.constant 0 : i32
    %c0_i32_1 = arith.constant 0 : i32
    return %c0_i32, %c0_i32_0 : i32, i32
  }
  func.func @transform_3(%arg0: i32, %arg1: i32) -> (i32, i32, i32, i32) {
    %c0_i32 = arith.constant 0 : i32
    %c0_i32_0 = arith.constant 0 : i32
    %c0_i32_1 = arith.constant 0 : i32
    return %arg0, %arg1, %c0_i32, %c0_i32_0 : i32, i32, i32, i32
  }
}

</mosaic_0001>

<bundles_post_ra>
// kernel: tpu_custom_call.1
= control target key start
LH: loop header
LB: loop body
LE: loop exit
PB: predicated region body
PF: predicated region fallthrough
CT: control target
= control target key end

     0   :  { %s1555_s12 = smov 0   ;;  %s1557_s13 = smov 0   ;;  %s2352_s0 = inlined_call_operand.vmem [shape: bf16[2,2,198,3], index: 0, kind: input, shape index: {}]   ;;  %s2353_s1 = inlined_call_operand.vmem [shape: bf16[27,8], index: 1, kind: input, shape index: {}]   ;;  %s2354_s2 = inlined_call_operand.vmem [shape: f32[1,8], index: 2, kind: input, shape index: {}]   ;;  %s2355_s3 = inlined_call_operand.vmem [shape: bf16[2,2,144,8], index: 3, kind: output, shape index: {}]  }
   0x1   :  { %s1559_s14 = smov 0   ;;  %s1561_s15 = smov 0  }
   0x2   :  { %s1563_s16 = smov 0  }
   0x3 LB: > { %s22_s17 = sadd.s32 1, %s1514_s14  ;;  %s25_s18 = sadd.s32 1, %s1518_s15  ;;  %s1522_s16 = sphi %s1563_s16, %s13_s16   ;;  %s1518_s15 = sphi %s1561_s15, %s2405_s15   ;;  %s1514_s14 = sphi %s1559_s14, %s2404_s14   ;;  %s1510_s13 = sphi %s1557_s13, %s2403_s13   ;;  %s1506_s12 = sphi %s1555_s12, %s2402_s12  }
   0x4   : > { %p23_p0 = scmp.ge.s32.totalorder %s22_s17, 2  ;;  %p1277_p1 = scmp.ge.s32.totalorder %s1522_s16, 1 }
   0x5   : > { %p157_p2 = scmp.lt.s32.totalorder %s1522_s16, 5 }
   0x6   : > { %s2407_s17 = smov (%p23_p0, %s22_s17), 0  ;;  %s2409_s18 = smov (!%p23_p0, %s25_s18), %s1518_s15 }
   0x7   : > { %p158_p3 = pnand %p1277_p1, %p157_p2  ;;  %p27_p4 = scmp.ge.s32.totalorder %s2409_s18, 2 }
   0x9   : > { %s2411_s18 = smov (%p27_p4, %s2409_s18), 0  ;;  %161 = sbr.rel (%p158_p3) target bundleno = 511 (0x1ff), region = 32 }
  0x10   : > { %p189_p5 = scmp.lt.s32.totalorder %s1510_s13, 1  ;;  %p191_p6 = scmp.lt.s32.totalorder %s1506_s12, 1  ;;  %vm386_vm0 = vcmask 1046528   ;;  %vm538_vm1 = vcmask 1045504   ;;  %vm690_vm2 = vcmask 1044480   ;;  %vm1534_vm6 = vmmov 0  }
  0x11   : > { %vm288_vm3 = vsmask.f32 7424  ;;  %vm462_vm4 = vsmask.f32 6400  ;;  %s1524_s26 = smov 9   ;;  %s1525_s27 = smov 6  }
  0x12   : > { %s2413_s13 = smov (!%p189_p5, %s1510_s13), 1  ;;  %s2415_s12 = smov (!%p191_p6, %s1506_s12), 1  ;;  %vm614_vm5 = vsmask.f32 5376  ;;  %vm728_vm7 = vcmask 23552   ;;  %vm747_vm8 = vcmask 48128  }
  0x13   : > { %s1407_s19 = smul.u32 50, %s2413_s13  ;;  %s1526_s28 = smov 18   ;;  %vm766_vm9 = vcmask 72704   ;;  %vm785_vm10 = vcmask 97280   ;;  %vm804_vm11 = vcmask 121856   ;;  %vm823_vm12 = vcmask 146432  }
  0x14   : > { %s1406_s20 = smul.u32 25, %s2415_s12  ;;  %s1527_s29 = smov 15   ;;  %vm842_vm13 = vcmask 171008   ;;  %vm861_vm14 = vcmask 195584   ;;  %vm902_vm15 = vcmask 220160  }
  0x15   : > { %s1528_s30 = smov 24   ;;  %s1529_s4 = smov 3  }
  0x16   : > { %s195_s21 = sadd.s32 %s1407_s19, %s1406_s20  ;;  %s1530_s5 = smov 12  }
  0x17   : > { %s1278_s22 = sshll.u32 %s195_s21, 2  ;;  %s1531_s6 = smov 21  }
  0x18   : > { %s1594_s25 = scalar_lea.vmem %s2352_s0, %s1278_s22  ;;  %s1408_s11 = smul.u32 18, %s2415_s12 }
  0x19   : > { %v211_v0 = vld [vmem:[%s1594_s25 + $0xc] sm:$0xf]  ;;  %v212_v1 = vld [vmem:[%s1594_s25 + $0x10] sm:$0xf]  ;;  %v213_v2 = vld [vmem:[%s1594_s25 + $0x14] sm:$0xf] }
  0x1a   : > { %v228_v3 = vld [vmem:[%s1594_s25 + $0x8] sm:$0xe]  ;;  %v1600_v4 = vcombine.low %v212_v1, %v213_v2  ;;  %v209_v5 = vld [vmem:[%s1594_s25 + $0x4] sm:$0xf]  ;;  %v227_v8 = vld [vmem:[%s1594_s25] sm:$0xe] }
  0x1b   : > { %v210_v6 = vld [vmem:[%s1594_s25 + $0x8] sm:$0xf]  ;;  %v1291_v7 = vcombine.low %v228_v3, %v211_v0  ;;  %v208_v10 = vld [vmem:[%s1594_s25] sm:$0xf]  ;;  %v1290_v12 = vcombine.low %v227_v8, %v209_v5  ;;  %v234_v14 = vld [vmem:[%s1594_s25 + $0x10] sm:$0xc] }
  0x1c   : > { %v1605_v9 = vcombine.low %v210_v6, %v211_v0  ;;  %v1609_v11 = vrot.slane %v1600_v4, 1  ;;  %v1611_v13 = vcombine.low %v208_v10, %v209_v5  ;;  %v1615_v15 = vld [vmem:[%s1594_s25 + $0x18] sm:$0xff]   ;;  %v1296_v18 = vcombine.low %v234_v14, %v213_v2  ;;  %v233_v19 = vld [vmem:[%s1594_s25 + $0x8] sm:$0xc]  ;;  %v239_v24 = vld [vmem:[%s1594_s25 + $0x10] sm:$0x8] }
  0x1d   : > { %v435_v16 = vrot.slane %v1291_v7, 1  ;;  %v540_v20 = vrot.slane %v1600_v4, 2  ;;  %v387_v21 = vrot.slane %v1290_v12, 1  ;;  %v1621_v22 = vrot.slane %v1615_v15, 2  ;;  %v1643_v42 = vld [vmem:[%s1594_s25 + $0x28] sm:$0xff]   ;;  %v1658_v51 = vld [vmem:[%s1594_s25 + $0x30] sm:$0xff]  }
  0x1e   : > { %2371 = vst [vmem:[#allocation2_spill] sm:$0xff] %v1605_v9  ;;  %2372 = vst [vmem:[#allocation3_spill] sm:$0xff] %v1611_v13  ;;  %v388_v17 = vrot.slane %v1605_v9, 1  ;;  %v1295_v23 = vcombine.low %v233_v19, %v211_v0  ;;  %v2362_v25 = vrot.slane %v1615_v15, 3  ;;  %v587_v27 = vrot.slane %v1296_v18, 2  ;;  %s1409_s19 = smul.u32 36, %s2413_s13 }
  0x1f   : > { %v436_v26 = vsel %vm386_vm0, %v435_v16, %v1609_v11  ;;  %v1300_v28 = vcombine.low %v239_v24, %v213_v2  ;;  %v290_v29 = vshrl.u32 %v1611_v13, 16  ;;  %v292_v32 = vshll.u32 %v1611_v13, 16 }
  0x20   : > { %441 = vrot.lane.b32.xlu1 %v436_v26, %s1524_s26  ;;  %v389_v30 = vsel %vm386_vm0, %v387_v21, %v388_v17  ;;  %v539_v31 = vrot.slane %v1295_v23, 2  ;;  %v297_v33 = vshll.u32 %v1605_v9, 16  ;;  %v588_v34 = vsel %vm538_vm1, %v587_v27, %v1621_v22  ;;  %s204_s22 = sadd.s32 %s1409_s19, %s1408_s11 }
  0x21   : > { %406 = vrot.lane.b32.xlu0 %v389_v30, %s1525_s27  ;;  %v691_v35 = vrot.slane %v1300_v28, 3  ;;  %v305_v36 = vshll.u32 %v1600_v4, 16  ;;  %v2361_v37 = vshrl.u32 %v1600_v4, 16  ;;  %v294_v39 = vrot.slane %v292_v32, 1  ;;  %v1713_v28 = vld [vmem:[%s1594_s25 + $0x40] sm:$0xff]   ;;  %s1279_s23 = sshll.u32 %s204_s22, 2 }
  0x22   : > { %v541_v38 = vsel %vm538_vm1, %v539_v31, %v540_v20  ;;  %v299_v40 = vrot.slane %v297_v33, 1  ;;  %v464_v41 = vshrl.u32 %v1291_v7, 16  ;;  %v467_v44 = vshll.u32 %v1291_v7, 16  ;;  %v1684_v7 = vld [vmem:[%s1594_s25 + $0x38] sm:$0xff]   ;;  %2373 = vst [vmem:[#allocation4_spill] sm:$0xff] %v1713_v28  ;;  %s2283_s13 = scalar_lea.vmem %s2355_s3, %s1279_s23 }
  0x23   : > { %v693_v43 = vsel %vm690_vm2, %v691_v35, %v2362_v25  ;;  %v471_v45 = vrot.slane %v2361_v37, 1  ;;  %v472_v46 = vrot.slane %v305_v36, 2  ;;  %v295_v47 = vor.u32 %v294_v39, %v290_v29 }
  0x24   : > { %593 = vrot.lane.b32.xlu1 %v588_v34, %s1526_s28  ;;  %v466_v48 = vrot.slane %v464_v41, 1  ;;  %v1652_v49 = vshll.u32 %v1615_v15, 16  ;;  %v1655_v50 = vshrl.u32 %v1615_v15, 16  ;;  %v469_v52 = vrot.slane %v467_v44, 2  ;;  %v1722_v34 = vld [vmem:[%s1594_s25 + $0x20] sm:$0xff]  }
  0x25   : > { %558 = vrot.lane.b32.xlu0 %v541_v38, %s1527_s29  ;;  %v1661_v53 = vor.u32 %v472_v46, %v471_v45  ;;  %v616_v54 = vshrl.u32 %v1296_v18, 16  ;;  %v619_v55 = vshll.u32 %v1296_v18, 16  ;;  %v300_v56 = vsel %vm288_vm3, %v295_v47, %v299_v40 }
  0x26   : > { %v623_v57 = vrot.slane %v1655_v50, 2  ;;  %v624_v58 = vrot.slane %v1652_v49, 3  ;;  %v1667_v59 = vshll.u32 %v1643_v42, 16  ;;  %v470_v60 = vor.u32 %v469_v52, %v466_v48 }
  0x27   : > { %v618_v61 = vrot.slane %v616_v54, 2  ;;  %v621_v62 = vrot.slane %v619_v55, 3  ;;  %v1670_v63 = vshrl.u32 %v1643_v42, 16  ;;  %v1677_v2 = vshll.u32 %v1658_v51, 16 }
  0x28   : > { %710 = vrot.lane.b32.xlu1 %v693_v43, %s1528_s30  ;;  %v1673_v0 = vor.u32 %v624_v58, %v623_v57  ;;  %v2360_v1 = vrot.slane %v1667_v59, 1  ;;  %v301_v3 = vshrl.u32 %v1605_v9, 16  ;;  %v474_v5 = vsel %vm462_vm4, %v470_v60, %v1661_v53 }
  0x29   : > { %365 = vrot.lane.b32.xlu0 %v300_v56, %s1529_s4  ;;  %v622_v6 = vor.u32 %v621_v62, %v618_v61  ;;  %v339_v10 = vrot.slane %v1677_v2, 1  ;;  %v1690_v14 = vrot.slane %v305_v36, 1  ;;  %v396_v18 = vrot.slane %v1643_v42, 1 }
  0x2a   : > { %v335_v8 = vor.u32 %v1670_v63, %v2360_v1  ;;  %v303_v12 = vor.u32 %v301_v3, %v299_v40  ;;  %v1697_v19 = vshrl.u32 %v1658_v51, 16  ;;  %v398_v23 = vrot.slane %v1658_v51, 1 }
  0x2b   : > { %v626_v16 = vsel %vm614_vm5, %v622_v6, %v1673_v0  ;;  %v1705_v24 = vshll.u32 %v1684_v7, 16  ;;  %v1708_v26 = vshrl.u32 %v1684_v7, 16  ;;  %v2358_v29 = vrot.slane %v1684_v7, 1 }
  0x2c   : > { %517 = vrot.lane.b32.xlu1 %v474_v5, %s1530_s5  ;;  %v340_v21 = vsel %vm288_vm3, %v335_v8, %v339_v10  ;;  %v308_v27 = vsel %vm288_vm3, %v303_v12, %v1690_v14  ;;  %v487_v30 = vrot.slane %v1697_v19, 1  ;;  %v488_v31 = vrot.slane %v1677_v2, 2  ;;  %v1784_v8 = vld [vmem:[%s1594_s25 + $0x48] sm:$0xff]  }
  0x2d   : > { %669 = vrot.lane.b32.xlu0 %v626_v16, %s1531_s6  ;;  %v475_v32 = vrot.slane %v1655_v50, 1  ;;  %v476_v33 = vrot.slane %v1652_v49, 2  ;;  %v1728_v35 = vsel %vm386_vm0, %v396_v18, %v398_v23  ;;  %v491_v36 = vrot.slane %v1708_v26, 1 }
  0x2e   : > { %2374 = vst [vmem:[#allocation5_spill] sm:$0xff] %v1728_v35  ;;  %v492_v38 = vrot.slane %v1705_v24, 2  ;;  %v391_v39 = vsel %vm386_vm0, %v388_v17, %v1609_v11  ;;  %v2357_v40 = vrot.slane %v1615_v15, 1  ;;  %v1738_v41 = vshll.u32 %v1713_v28, 16 }
  0x2f   : > { %v1741_v43 = vshrl.u32 %v1713_v28, 16  ;;  %v1746_v44 = vsel %vm386_vm0, %v398_v23, %v2358_v29  ;;  %v1748_v45 = vor.u32 %v488_v31, %v487_v30  ;;  %v548_v46 = vrot.slane %v1658_v51, 2  ;;  %v1874_v31 = vld [vmem:[%s1594_s25 + $0x50] sm:$0xff]  }
  0x30   : > { %375 = vrot.lane.b32.xlu1 %v340_v21, %s1529_s4  ;;  %v550_v47 = vrot.slane %v1684_v7, 2  ;;  %v1754_v17 = vor.u32 %v476_v33, %v475_v32  ;;  %v552_v48 = vrot.slane %v1713_v28, 2  ;;  %v1758_v52 = vshll.u32 %v1722_v34, 16 }
  0x31   : > { %367 = vrot.lane.b32.xlu0 %v308_v27, %s1529_s4  ;;  %v1761_v54 = vshrl.u32 %v1722_v34, 16  ;;  %v1764_v55 = vor.u32 %v492_v38, %v491_v36  ;;  %v2356_v56 = vrot.slane %v1722_v34, 2  ;;  %v639_v57 = vrot.slane %v1708_v26, 2 }
  0x32   : > { %v640_v58 = vrot.slane %v1705_v24, 3  ;;  %v1773_v60 = vsel %vm386_vm0, %v1609_v11, %v2357_v40  ;;  %v643_v61 = vrot.slane %v1741_v43, 2  ;;  %v644_v62 = vrot.slane %v1738_v41, 3 }
  0x33   : > { %v543_v3 = vsel %vm538_vm1, %v540_v20, %v1621_v22  ;;  %v627_v5 = vrot.slane %v1761_v54, 2  ;;  %v628_v6 = vrot.slane %v1758_v52, 3  ;;  %v478_v11 = vsel %vm462_vm4, %v1661_v53, %v1754_v17 }
  0x34   : > { %416 = vrot.lane.b32.xlu1 %v1728_v35, %s1525_s27  ;;  %v1794_v12 = vsel %vm538_vm1, %v548_v46, %v550_v47  ;;  %v2359_v20 = vrot.slane %v1684_v7, 3  ;;  %v702_v16 = vrot.slane %v1713_v28, 3  ;;  %v494_v21 = vsel %vm462_vm4, %v1748_v45, %v1764_v55  ;;  %v1478_v35 = vld [vmem:[%s1594_s25 + $0x50] ss:$0 sps:$4 sm:$0x11]  }
  0x35   : > { %408 = vrot.lane.b32.xlu0 %v391_v39, %s1525_s27  ;;  %2375 = vst [vmem:[#allocation6_spill] sm:$0xff] %v1794_v12  ;;  %v1804_v23 = vsel %vm538_vm1, %v550_v47, %v552_v48  ;;  %v1810_v53 = vsel %vm538_vm1, %v1621_v22, %v2356_v56  ;;  %v1812_v27 = vor.u32 %v640_v58, %v639_v57  ;;  %v495_v38 = vrot.slane %v1741_v43, 1 }
  0x36   : > { %v1814_v30 = vor.u32 %v644_v62, %v643_v61  ;;  %v1820_v32 = vor.u32 %v1697_v19, %v339_v10  ;;  %v1823_v36 = vor.u32 %v628_v6, %v627_v5  ;;  %v496_v22 = vrot.slane %v1738_v41, 2 }
  0x37   : > { %v1828_v39 = vrot.slane %v1784_v8, 2  ;;  %v1834_v47 = vsel %vm690_vm2, %v2359_v20, %v702_v16  ;;  %v479_v10 = vrot.slane %v1761_v54, 1  ;;  %v480_v57 = vrot.slane %v1758_v52, 2 }
  0x38   : > { %451 = vrot.lane.b32.xlu1 %v1746_v44, %s1524_s26  ;;  %v500_v58 = vshrl.u32 %v1784_v8, 16  ;;  %v503_v62 = vshll.u32 %v1784_v8, 16  ;;  %v631_v5 = vrot.slane %v1670_v63, 2  ;;  %v632_v6 = vrot.slane %v1667_v59, 3 }
  0x39   : > { %443 = vrot.lane.b32.xlu0 %v1773_v60, %s1524_s26  ;;  %v1842_v61 = vsel %vm538_vm1, %v552_v48, %v1828_v39  ;;  %v2364_v56 = vrot.slane %v1652_v49, 1  ;;  %v1852_v40 = vrot.slane %v1713_v28, 1  ;;  %v630_v48 = vsel %vm614_vm5, %v1673_v0, %v1823_v36 }
  0x3a   : > { %v2363_v29 = vrot.slane %v1722_v34, 1  ;;  %v1859_v20 = vor.u32 %v496_v22, %v495_v38  ;;  %v1864_v1 = vor.u32 %v480_v57, %v479_v10  ;;  %v323_v0 = vrot.slane %v1758_v52, 1 }
  0x3b   : > { %v319_v25 = vor.u32 %v1655_v50, %v2364_v56  ;;  %v647_v38 = vrot.slane %v500_v58, 2  ;;  %v648_v22 = vrot.slane %v503_v62, 3  ;;  %v1877_v33 = vor.u32 %v632_v6, %v631_v5 }
  0x3c   : > { %527 = vrot.lane.b32.xlu1 %v494_v21, %s1530_s5  ;;  %v646_v21 = vsel %vm614_vm5, %v1812_v27, %v1814_v30  ;;  %v437_v10 = vrot.slane %v1784_v8, 1  ;;  %v1889_v50 = vsel %vm386_vm0, %v2363_v29, %v396_v18  ;;  %v502_v52 = vrot.slane %v500_v58, 1 }
  0x3d   : > { %519 = vrot.lane.b32.xlu0 %v478_v11, %s1530_s5  ;;  %v704_v11 = vrot.slane %v1784_v8, 3  ;;  %v1882_v57 = vsel %vm288_vm3, %v319_v25, %v323_v0  ;;  %v505_v5 = vrot.slane %v503_v62, 2  ;;  %v483_v8 = vrot.slane %v1670_v63, 1  ;;  %v1477_v63 = vld [vmem:[%s1594_s25 + $0x48] ss:$0 sps:$4 sm:$0x11]  }
  0x3e   : > { %v484_v6 = vrot.slane %v1667_v59, 2  ;;  %v2376_v18 = vrot.slane %v1643_v42, 2  ;;  %v652_v29 = vshrl.u32 %v1874_v31, 16  ;;  %v655_v62 = vshll.u32 %v1874_v31, 16 }
  0x3f   : > { %v1867_v37 = vsel %vm690_vm2, %v702_v16, %v704_v11  ;;  %v1912_v56 = vor.u32 %v505_v5, %v502_v52  ;;  %v635_v25 = vrot.slane %v1697_v19, 2  ;;  %v636_v28 = vrot.slane %v1677_v2, 3 }
  0x40   : > { %568 = vrot.lane.b32.xlu1 %v1794_v12, %s1527_s29  ;;  %v1905_v58 = vsel %vm538_vm1, %v2376_v18, %v548_v46  ;;  %v485_v16 = vor.u32 %v484_v6, %v483_v8  ;;  %v2378_v9 = vrot.slane %v1874_v31, 2  ;;  %v654_v18 = vrot.slane %v652_v29, 2  ;;  %v1479_v8 = vld [vmem:[%s1594_s25 + $0x50] ss:$0 sps:$4 sm:$0x33]  }
  0x41   : > { %560 = vrot.lane.b32.xlu0 %v543_v3, %s1527_s29  ;;  %v1893_v3 = vsel %vm386_vm0, %v1852_v40, %v437_v10  ;;  %2377 = vst [vmem:[#allocation7_spill] sm:$0xff] %v1905_v58  ;;  %v657_v12 = vrot.slane %v655_v62, 3  ;;  %v706_v13 = vrot.slane %v1874_v31, 3  ;;  %v1924_v58 = vor.u32 %v648_v22, %v647_v38 }
  0x42   : > { %v1920_v46 = vsel %vm538_vm1, %v1828_v39, %v2378_v9  ;;  %v1929_v19 = vsel %vm462_vm4, %v1859_v20, %v1912_v56  ;;  %v1933_v2 = vsel %vm462_vm4, %v1864_v1, %v485_v16  ;;  %v637_v52 = vor.u32 %v636_v28, %v635_v25 }
  0x43   : > { %v1936_v9 = vor.u32 %v657_v12, %v654_v18  ;;  %v1941_v29 = vsel %vm690_vm2, %v704_v11, %v706_v13  ;;  %v2379_v38 = vrot.slane %v1738_v41, 1  ;;  %v361_v5 = vshll.u32 %v1477_v63, 16 }
  0x44   : > { %603 = vrot.lane.b32.xlu1 %v1804_v23, %s1526_s28  ;;  %v2380_v28 = vrot.slane %v1722_v34, 3  ;;  %v1955_v6 = vsel %vm614_vm5, %v1877_v33, %v637_v52  ;;  %v327_v11 = vor.u32 %v1761_v54, %v323_v0  ;;  %v404_v25 = vrot.slane %v1477_v63, 1  ;;  %v1482_v63 = vld [vmem:[%s1594_s25 + $0x58] ss:$0 sps:$4 sm:$0x33]  }
  0x45   : > { %595 = vrot.lane.b32.xlu0 %v1810_v53, %s1526_s28  ;;  %v359_v22 = vor.u32 %v1741_v43, %v2379_v38  ;;  %v1480_v43 = vld [vmem:[%s2353_s1] sm:$0xff]   ;;  %v1967_v18 = vsel %vm614_vm5, %v1924_v58, %v1936_v9  ;;  %v363_v38 = vrot.slane %v361_v5, 1 }
  0x46   : > { %v1976_v0 = vsel %vm386_vm0, %v1852_v40, %v404_v25  ;;  %v2384_v25 = vrot.slane %v1705_v24, 1 }
  0x48   : > { %679 = vrot.lane.b32.xlu1 %v646_v21, %s1531_s6  ;;  %v2381_v21 = vrot.slane %v1615_v15, 3 }
  0x49   : > { %671 = vrot.lane.b32.xlu0 %v630_v48, %s1531_s6  ;;  %v2382_v48 = vshrl.u32 %v1600_v4, 16 }
  0x4a   : > { %v695_v12 = vsel %vm690_vm2, %v2381_v21, %v2380_v28  ;;  %v439_v28 = vrot.slane %v1478_v35, 1  ;;  %v2383_v21 = vrot.slane %v1667_v59, 1  ;;  %v1532_v35 = vmov 0.0  }
  0x4b   : > { %v311_v62 = vor.u32 %v2382_v48, %v1690_v14  ;;  %v1982_v14 = vsel %vm288_vm3, %v359_v22, %v363_v38  ;;  %1362 = vmatprep.subr.bf16.mxu0 %v1532_v35  ;;  %v509_v59 = vshrl.u32 %v1479_v8, 16  ;;  %v348_v48 = vsel %vm288_vm3, %v1820_v32, %v2384_v25  ;;  %v1483_v22 = vld [vmem:[%s1594_s25 + $0x58] ss:$0 sps:$4 sm:$0x77]   ;;  %1402 = vmatprep.subr.bf16.mxu1 %v1532_v35 }
  0x4c   : > { %v1972_v54 = vsel %vm288_vm3, %v327_v11, %v2383_v21  ;;  %720 = vrot.lane.b32.xlu1 %v1834_v47, %s1528_s30  ;;  %v1985_v5 = vsel %vm386_vm0, %v437_v10, %v439_v28  ;;  %v512_v11 = vshll.u32 %v1479_v8, 16  ;;  %v1995_v47 = vsel %vm462_vm4, %v485_v16, %v1748_v45  ;;  %1363 = vmatpush3.bf16.msra.mxu0 %v1480_v43 }
  0x4d   : > { %712 = vrot.lane.b32.xlu0 %v695_v12, %s1528_s30  ;;  %v2385_v10 = vrot.slane %v1652_v49, 1  ;;  %v511_v28 = vrot.slane %v509_v59, 1  ;;  %1364 = vmatprep.subr.bf16.mxu0 %v1532_v35  ;;  %v1481_v12 = vld [vmem:[%s2353_s1 + $0x8] sm:$0x3f]   ;;  %v556_v32 = vrot.slane %v1479_v8, 2  ;;  %v591_v25 = vrot.slane %v1482_v63, 2 }
  0x4e   : > { %v514_v21 = vrot.slane %v512_v11, 2  ;;  %1404 = vmatpush3.bf16.msra.mxu1 %v1480_v43  ;;  %v698_v45 = vrot.slane %v1658_v51, 3  ;;  %v1533_v16 = vmov 65535   ;;  %1366 = vmatprep.mubr.msk.bf16.mxu0 %vm1534_vm6, %v1532_v35  ;;  %v2386_v43 = vrot.slane %v1874_v31, 2 }
  0x4f   : > { %v316_v38 = vsel %vm288_vm3, %v311_v62, %v2385_v10  ;;  %v923_v62 = vsel %vm690_vm2, 4294967295, %v1533_v16  ;;  %v2014_v59 = vsel %vm538_vm1, %v1828_v39, %v556_v32  ;;  %v661_v11 = vshrl.u32 %v1483_v22, 16  ;;  %1403 = vmatprep.subr.bf16.mxu1 %v1532_v35  ;;  %1386 = vmatprep.mubr.msk.bf16.mxu1 %vm1534_vm6, %v1532_v35 }
  0x50   : > { %377 = vrot.lane.b32.xlu1 %v348_v48, %s1529_s4  ;;  %v515_v49 = vor.u32 %v514_v21, %v511_v28  ;;  %v924_v8 = vsel %vm538_vm1, %v923_v62, 0  ;;  %v2020_v63 = vsel %vm538_vm1, %v2386_v43, %v591_v25  ;;  %v2029_v39 = vsel %vm614_vm5, %v637_v52, %v1812_v27 }
  0x51   : > { %369 = vrot.lane.b32.xlu0 %v316_v38, %s1529_s4  ;;  %v926_v10 = vand.u32 %v1481_v12, %v924_v8  ;;  %v664_v38 = vshll.u32 %v1483_v22, 16  ;;  %v663_v28 = vrot.slane %v661_v11, 2  ;;  %v708_v21 = vrot.slane %v1483_v22, 3 }
  0x52   : > { %v2025_v48 = vsel %vm462_vm4, %v1912_v56, %v515_v49  ;;  %v2387_v32 = vrot.slane %v1684_v7, 3  ;;  %v2388_v27 = vrot.slane %v1684_v7, 1  ;;  %v2389_v12 = vrot.slane %v1722_v34, 1 }
  0x53   : > { %1365 = vmatpush3.bf16.msra.mxu0 %v926_v10  ;;  %v666_v56 = vrot.slane %v664_v38, 3  ;;  %v2051_v22 = vsel %vm690_vm2, %v706_v13, %v708_v21  ;;  %1405 = vmatpush3.bf16.msra.mxu1 %v926_v10  ;;  %v498_v13 = vsel %vm462_vm4, %v1764_v55, %v1859_v20  ;;  %v2391_v31 = vrot.slane %v1643_v42, 2 }
  0x54   : > { %v2038_v25 = vsel %vm690_vm2, %v698_v45, %v2387_v32  ;;  %418 = vrot.lane.b32.xlu1 %v1746_v44, %s1525_s27  ;;  %v403_v52 = vsel %vm386_vm0, %v2388_v27, %v1852_v40  ;;  %v2390_v44 = vrot.slane %v1615_v15, 1  ;;  %v482_v40 = vsel %vm462_vm4, %v1754_v17, %v1864_v1 }
  0x55   : > { %410 = vrot.lane.b32.xlu0 %v1773_v60, %s1525_s27  ;;  %v667_v16 = vor.u32 %v666_v56, %v663_v28  ;;  %v650_v1 = vsel %vm614_vm5, %v1814_v30, %v1924_v58  ;;  %v634_v17 = vsel %vm614_vm5, %v1823_v36, %v1877_v33  ;;  %v696_v20 = vrot.slane %v1643_v42, 3 }
  0x56   : > { %v395_v49 = vsel %vm386_vm0, %v2390_v44, %v2389_v12  ;;  %v2394_v62 = vrot.slane %v1722_v34, 3  ;;  %v2395_v30 = vrot.slane %v1738_v41, 1 }
  0x57   : > { %v2061_v60 = vsel %vm614_vm5, %v1936_v9, %v667_v16  ;;  %v2392_v9 = vrot.slane %v1722_v34, 2 }
  0x58   : > { %453 = vrot.lane.b32.xlu1 %v403_v52, %s1524_s26  ;;  %v697_v8 = vsel %vm690_vm2, %v2394_v62, %v696_v20 }
  0x59   : > { %445 = vrot.lane.b32.xlu0 %v395_v49, %s1524_s26  ;;  %v547_v55 = vsel %vm538_vm1, %v2392_v9, %v2391_v31  ;;  %vm1159_vm1 = vcmask 60416  }
  0x5c   : > { %529 = vrot.lane.b32.xlu1 %v498_v13, %s1530_s5 }
  0x5d   : > { %521 = vrot.lane.b32.xlu0 %v482_v40, %s1530_s5 }
  0x60   : > { %570 = vrot.lane.b32.xlu1 %v1804_v23, %s1527_s29  ;;  %v2393_v23 = vrot.slane %v1705_v24, 1  ;;  %v699_v24 = vsel %vm690_vm2, %v696_v20, %v698_v45 }
  0x61   : > { %562 = vrot.lane.b32.xlu0 %v1810_v53, %s1527_s29 }
  0x62   : > { %v351_v53 = vor.u32 %v1708_v26, %v2393_v23 }
  0x64   : > { %605 = vrot.lane.b32.xlu1 %v1842_v61, %s1526_s28  ;;  %v356_v33 = vsel %vm288_vm3, %v351_v53, %v2395_v30 }
  0x65   : > { %597 = vrot.lane.b32.xlu0 %v547_v55, %s1526_s28 }
  0x68   : > { %681 = vrot.lane.b32.xlu1 %v650_v1, %s1531_s6 }
  0x69   : > { %673 = vrot.lane.b32.xlu0 %v634_v17, %s1531_s6 }
  0x6c   : > { %722 = vrot.lane.b32.xlu1 %v1867_v37, %s1528_s30  ;;  %v2396_v37 = vld [vmem:[#allocation7_spill] sm:$0xff] }
  0x6d   : > { %714 = vrot.lane.b32.xlu0 %v697_v8, %s1528_s30 }
  0x70   : > { %379 = vrot.lane.b32.xlu1 %v356_v33, %s1529_s4 }
  0x71   : > { %371 = vrot.lane.b32.xlu0 %v1882_v57, %s1529_s4  ;;  %v2397_v57 = vld [vmem:[#allocation5_spill] sm:$0xff] }
  0x74   : > { %420 = vrot.lane.b32.xlu1 %v403_v52, %s1525_s27  ;;  %v2400_v52 = vld [vmem:[#allocation2_spill] sm:$0xff] }
  0x75   : > { %412 = vrot.lane.b32.xlu0 %v395_v49, %s1525_s27 }
  0x78   : > { %455 = vrot.lane.b32.xlu1 %v1893_v3, %s1524_s26 }
  0x79   : > { %447 = vrot.lane.b32.xlu0 %v1889_v50, %s1524_s26 }
  0x7c   : > { %531 = vrot.lane.b32.xlu1 %v1929_v19, %s1530_s5 }
  0x7d   : > { %523 = vrot.lane.b32.xlu0 %v1933_v2, %s1530_s5 }
  0x80   : > { %572 = vrot.lane.b32.xlu1 %v1842_v61, %s1527_s29 }
  0x81   : > { %564 = vrot.lane.b32.xlu0 %v547_v55, %s1527_s29 }
  0x84   : > { %607 = vrot.lane.b32.xlu1 %v1920_v46, %s1526_s28  ;;  %v2398_v46 = vld [vmem:[#allocation3_spill] sm:$0xff] }
  0x85   : > { %599 = vrot.lane.b32.xlu0 %v2396_v37, %s1526_s28 }
  0x88   : > { %683 = vrot.lane.b32.xlu1 %v1967_v18, %s1531_s6 }
  0x89   : > { %675 = vrot.lane.b32.xlu0 %v1955_v6, %s1531_s6 }
  0x8c   : > { %724 = vrot.lane.b32.xlu1 %v1941_v29, %s1528_s30 }
  0x8d   : > { %716 = vrot.lane.b32.xlu0 %v699_v24, %s1528_s30 }
  0x90   : > { %381 = vrot.lane.b32.xlu1 %v1982_v14, %s1529_s4 }
  0x91   : > { %373 = vrot.lane.b32.xlu0 %v1972_v54, %s1529_s4 }
  0x92   : > { %v442_v26 = vpop.permute.xlu1 %441 }
  0x93   : > { %v407_v41 = vpop.permute.xlu0 %406 }
  0x94   : > { %422 = vrot.lane.b32.xlu1 %v1976_v0, %s1525_s27 }
  0x95   : > { %414 = vrot.lane.b32.xlu0 %v1889_v50, %s1525_s27 }
  0x96   : > { %v594_v36 = vpop.permute.xlu1 %593 }
  0x97   : > { %v559_v61 = vpop.permute.xlu0 %558 }
  0x98   : > { %457 = vrot.lane.b32.xlu1 %v1985_v5, %s1524_s26 }
  0x99   : > { %449 = vrot.lane.b32.xlu0 %v2397_v57, %s1524_s26 }
  0x9a   : > { %v711_v3 = vpop.permute.xlu1 %710 }
  0x9b   : > { %v366_v58 = vpop.permute.xlu0 %365 }
  0x9c   : > { %v730_v19 = vsel %vm728_vm7, %v2398_v46, %v366_v58  ;;  %533 = vrot.lane.b32.xlu1 %v2025_v48, %s1530_s5 }
  0x9d   : > { %v749_v50 = vsel %vm747_vm8, %v730_v19, %v407_v41  ;;  %525 = vrot.lane.b32.xlu0 %v1995_v47, %s1530_s5 }
  0x9e   : > { %v518_v2 = vpop.permute.xlu1 %517  ;;  %v768_v29 = vsel %vm766_vm9, %v749_v50, %v442_v26 }
  0x9f   : > { %v787_v6 = vsel %vm785_vm10, %v768_v29, %v518_v2  ;;  %v670_v18 = vpop.permute.xlu0 %669 }
  0xa0   : > { %v806_v54 = vsel %vm804_vm11, %v787_v6, %v559_v61  ;;  %574 = vrot.lane.b32.xlu1 %v2014_v59, %s1527_s29  ;;  %v2399_v59 = vld [vmem:[#allocation6_spill] sm:$0xff] }
  0xa1   : > { %v825_v0 = vsel %vm823_vm12, %v806_v54, %v594_v36  ;;  %566 = vrot.lane.b32.xlu0 %v2396_v37, %s1527_s29 }
  0xa2   : > { %v844_v14 = vsel %vm842_vm13, %v825_v0, %v670_v18  ;;  %v376_v5 = vpop.permute.xlu1 %375 }
  0xa3   : > { %v368_v47 = vpop.permute.xlu0 %367  ;;  %v863_v45 = vsel %vm861_vm14, %v844_v14, %v711_v3  ;;  %v740_v27 = vsel %vm728_vm7, %v1643_v42, %v376_v5 }
  0xa4   : > { %609 = vrot.lane.b32.xlu1 %v2020_v63, %s1526_s28  ;;  %1367 = vmatmul.mubr.msk.bf16.vlgmr.msra.gmra.mrb[0].mxu0 %vm902_vm15, %v863_v45 }
  0xa5   : > { %601 = vrot.lane.b32.xlu0 %v2399_v59, %s1526_s28  ;;  %1370 = vmatprep.mubr.msk.bf16.mxu0 %vm1534_vm6, %v1532_v35 }
  0xa6   : > { %v417_v43 = vpop.permute.xlu1 %416 }
  0xa7   : > { %v409_v11 = vpop.permute.xlu0 %408  ;;  %v759_v12 = vsel %vm747_vm8, %v740_v27, %v417_v43 }
  0xa8   : > { %685 = vrot.lane.b32.xlu1 %v2061_v60, %s1531_s6 }
  0xa9   : > { %677 = vrot.lane.b32.xlu0 %v2029_v39, %s1531_s6  ;;  %v732_v39 = vsel %vm728_vm7, %v2400_v52, %v368_v47 }
  0xaa   : > { %v452_v48 = vpop.permute.xlu1 %451  ;;  %v751_v44 = vsel %vm747_vm8, %v732_v39, %v409_v11 }
  0xab   : > { %v444_v10 = vpop.permute.xlu0 %443 }
  0xac   : > { %726 = vrot.lane.b32.xlu1 %v2051_v22, %s1528_s30  ;;  %v778_v22 = vsel %vm766_vm9, %v759_v12, %v452_v48 }
  0xad   : > { %718 = vrot.lane.b32.xlu0 %v2038_v25, %s1528_s30  ;;  %v770_v25 = vsel %vm766_vm9, %v751_v44, %v444_v10 }
  0xae   : > { %v528_v63 = vpop.permute.xlu1 %527 }
  0xaf   : > { %v520_v38 = vpop.permute.xlu0 %519  ;;  %v797_v16 = vsel %vm785_vm10, %v778_v22, %v528_v63 }
  0xb0   : > { %v789_v13 = vsel %vm785_vm10, %v770_v25, %v520_v38 }
  0xb2   : > { %v569_v28 = vpop.permute.xlu1 %568 }
  0xb3   : > { %v561_v21 = vpop.permute.xlu0 %560  ;;  %v816_v40 = vsel %vm804_vm11, %v797_v16, %v569_v28 }
  0xb4   : > { %v808_v42 = vsel %vm804_vm11, %v789_v13, %v561_v21 }
  0xb6   : > { %v604_v32 = vpop.permute.xlu1 %603 }
  0xb7   : > { %v596_v56 = vpop.permute.xlu0 %595  ;;  %v835_v31 = vsel %vm823_vm12, %v816_v40, %v604_v32 }
  0xb8   : > { %v827_v9 = vsel %vm823_vm12, %v808_v42, %v596_v56 }
  0xba   : > { %v680_v49 = vpop.permute.xlu1 %679 }
  0xbb   : > { %v672_v60 = vpop.permute.xlu0 %671  ;;  %v854_v55 = vsel %vm842_vm13, %v835_v31, %v680_v49 }
  0xbc   : > { %v846_v17 = vsel %vm842_vm13, %v827_v9, %v672_v60 }
  0xbe   : > { %v721_v1 = vpop.permute.xlu1 %720 }
  0xbf   : > { %v873_v20 = vsel %vm861_vm14, %v854_v55, %v721_v1  ;;  %v713_v23 = vpop.permute.xlu0 %712 }
  0xc0   : > { %v865_v53 = vsel %vm861_vm14, %v846_v17, %v713_v23  ;;  %1387 = vmatmul.mubr.msk.bf16.vlgmr.msra.gmra.mrb[0].mxu1 %vm902_vm15, %v873_v20 }
  0xc1   : > { %1371 = vmatmul.mubr.msk.bf16.gmra.mrb[4].mxu0 %vm902_vm15, %v865_v53  ;;  %1390 = vmatprep.mubr.msk.bf16.mxu1 %vm1534_vm6, %v1532_v35 }
  0xc2   : > { %v378_v62 = vpop.permute.xlu1 %377  ;;  %1374 = vmatprep.mubr.msk.bf16.mxu0 %vm1534_vm6, %v1532_v35 }
  0xc3   : > { %v370_v8 = vpop.permute.xlu0 %369  ;;  %v742_v58 = vsel %vm728_vm7, %v1658_v51, %v378_v62 }
  0xc4   : > { %v734_v46 = vsel %vm728_vm7, %v1600_v4, %v370_v8 }
  0xc6   : > { %v419_v30 = vpop.permute.xlu1 %418 }
  0xc7   : > { %v411_v33 = vpop.permute.xlu0 %410  ;;  %v761_v19 = vsel %vm747_vm8, %v742_v58, %v419_v30 }
  0xc8   : > { %v753_v50 = vsel %vm747_vm8, %v734_v46, %v411_v33 }
  0xca   : > { %v454_v37 = vpop.permute.xlu1 %453 }
  0xcb   : > { %v446_v24 = vpop.permute.xlu0 %445  ;;  %v780_v2 = vsel %vm766_vm9, %v761_v19, %v454_v37  ;;  %v2401_v19 = vld [vmem:[#allocation4_spill] sm:$0xff] }
  0xcc   : > { %v772_v6 = vsel %vm766_vm9, %v753_v50, %v446_v24 }
  0xce   : > { %v530_v26 = vpop.permute.xlu1 %529 }
  0xcf   : > { %v522_v41 = vpop.permute.xlu0 %521  ;;  %v799_v18 = vsel %vm785_vm10, %v780_v2, %v530_v26 }
  0xd0   : > { %v791_v0 = vsel %vm785_vm10, %v772_v6, %v522_v41 }
  0xd2   : > { %v571_v36 = vpop.permute.xlu1 %570 }
  0xd3   : > { %v563_v61 = vpop.permute.xlu0 %562  ;;  %v818_v14 = vsel %vm804_vm11, %v799_v18, %v571_v36 }
  0xd4   : > { %v810_v51 = vsel %vm804_vm11, %v791_v0, %v563_v61 }
  0xd6   : > { %v606_v57 = vpop.permute.xlu1 %605 }
  0xd7   : > { %v598_v3 = vpop.permute.xlu0 %597  ;;  %v837_v4 = vsel %vm823_vm12, %v818_v14, %v606_v57 }
  0xd8   : > { %v829_v5 = vsel %vm823_vm12, %v810_v51, %v598_v3 }
  0xda   : > { %v682_v29 = vpop.permute.xlu1 %681 }
  0xdb   : > { %v674_v54 = vpop.permute.xlu0 %673  ;;  %v856_v47 = vsel %vm842_vm13, %v837_v4, %v682_v29 }
  0xdc   : > { %v848_v59 = vsel %vm842_vm13, %v829_v5, %v674_v54 }
  0xde   : > { %v723_v45 = vpop.permute.xlu1 %722 }
  0xdf   : > { %v875_v43 = vsel %vm861_vm14, %v856_v47, %v723_v45  ;;  %v715_v11 = vpop.permute.xlu0 %714 }
  0xe0   : > { %v867_v48 = vsel %vm861_vm14, %v848_v59, %v715_v11  ;;  %1391 = vmatmul.mubr.msk.bf16.gmra.mrb[4].mxu1 %vm902_vm15, %v875_v43 }
  0xe1   : > { %1375 = vmatmul.mubr.msk.bf16.gmra.mrb[8].mxu0 %vm902_vm15, %v867_v48  ;;  %1394 = vmatprep.mubr.msk.bf16.mxu1 %vm1534_vm6, %v1532_v35 }
  0xe2   : > { %v380_v10 = vpop.permute.xlu1 %379  ;;  %1378 = vmatprep.mubr.msk.bf16.mxu0 %vm1534_vm6, %v1532_v35 }
  0xe3   : > { %v372_v63 = vpop.permute.xlu0 %371  ;;  %v744_v22 = vsel %vm728_vm7, %v1684_v7, %v380_v10 }
  0xe4   : > { %v736_v49 = vsel %vm728_vm7, %v1615_v15, %v372_v63  ;;  %v2276_v63 = vld [vmem:[%s2354_s2] ss:$0 sm:$0xff] }
  0xe6   : > { %v421_v38 = vpop.permute.xlu1 %420 }
  0xe7   : > { %v413_v28 = vpop.permute.xlu0 %412  ;;  %v763_v25 = vsel %vm747_vm8, %v744_v22, %v421_v38 }
  0xe8   : > { %v755_v16 = vsel %vm747_vm8, %v736_v49, %v413_v28 }
  0xea   : > { %v456_v21 = vpop.permute.xlu1 %455 }
  0xeb   : > { %v448_v32 = vpop.permute.xlu0 %447  ;;  %v782_v60 = vsel %vm766_vm9, %v763_v25, %v456_v21 }
  0xec   : > { %v774_v40 = vsel %vm766_vm9, %v755_v16, %v448_v32 }
  0xee   : > { %v532_v56 = vpop.permute.xlu1 %531 }
  0xef   : > { %v524_v27 = vpop.permute.xlu0 %523  ;;  %v801_v42 = vsel %vm785_vm10, %v782_v60, %v532_v56 }
  0xf0   : > { %v793_v9 = vsel %vm785_vm10, %v774_v40, %v524_v27 }
  0xf2   : > { %v573_v52 = vpop.permute.xlu1 %572 }
  0xf3   : > { %v565_v39 = vpop.permute.xlu0 %564  ;;  %v820_v55 = vsel %vm804_vm11, %v801_v42, %v573_v52 }
  0xf4   : > { %v812_v7 = vsel %vm804_vm11, %v793_v9, %v565_v39 }
  0xf6   : > { %v608_v12 = vpop.permute.xlu1 %607 }
  0xf7   : > { %v600_v44 = vpop.permute.xlu0 %599  ;;  %v839_v15 = vsel %vm823_vm12, %v820_v55, %v608_v12 }
  0xf8   : > { %v831_v1 = vsel %vm823_vm12, %v812_v7, %v600_v44 }
  0xfa   : > { %v684_v13 = vpop.permute.xlu1 %683 }
  0xfb   : > { %v676_v31 = vpop.permute.xlu0 %675  ;;  %v858_v17 = vsel %vm842_vm13, %v839_v15, %v684_v13 }
  0xfc   : > { %v850_v23 = vsel %vm842_vm13, %v831_v1, %v676_v31 }
  0xfe   : > { %v725_v20 = vpop.permute.xlu1 %724 }
  0xff   : > { %v877_v53 = vsel %vm861_vm14, %v858_v17, %v725_v20  ;;  %v717_v62 = vpop.permute.xlu0 %716 }
 0x100   : > { %v869_v8 = vsel %vm861_vm14, %v850_v23, %v717_v62  ;;  %1395 = vmatmul.mubr.msk.bf16.gmra.mrb[8].mxu1 %vm902_vm15, %v877_v53 }
 0x101   : > { %1379 = vmatmul.mubr.msk.bf16.gmra.mrb[12].mxu0 %vm902_vm15, %v869_v8  ;;  %1398 = vmatprep.mubr.msk.bf16.mxu1 %vm1534_vm6, %v1532_v35 }
 0x102   : > { %v382_v30 = vpop.permute.xlu1 %381  ;;  %1382 = vmatprep.mubr.msk.bf16.mxu0 %vm1534_vm6, %v1532_v35 }
 0x103   : > { %v374_v33 = vpop.permute.xlu0 %373  ;;  %v746_v50 = vsel %vm728_vm7, %v2401_v19, %v382_v30 }
 0x104   : > { %v738_v2 = vsel %vm728_vm7, %v1722_v34, %v374_v33 }
 0x106   : > { %v423_v37 = vpop.permute.xlu1 %422 }
 0x107   : > { %v415_v24 = vpop.permute.xlu0 %414  ;;  %v765_v29 = vsel %vm747_vm8, %v746_v50, %v423_v37 }
 0x108   : > { %v757_v35 = vsel %vm747_vm8, %v738_v2, %v415_v24 }
 0x10a   : > { %v458_v26 = vpop.permute.xlu1 %457 }
 0x10b   : > { %v450_v41 = vpop.permute.xlu0 %449  ;;  %v784_v6 = vsel %vm766_vm9, %v765_v29, %v458_v26 }
 0x10c   : > { %v776_v54 = vsel %vm766_vm9, %v757_v35, %v450_v41 }
 0x10e   : > { %v534_v36 = vpop.permute.xlu1 %533 }
 0x10f   : > { %v526_v61 = vpop.permute.xlu0 %525  ;;  %v803_v0 = vsel %vm785_vm10, %v784_v6, %v534_v36 }
 0x110   : > { %v795_v51 = vsel %vm785_vm10, %v776_v54, %v526_v61 }
 0x112   : > { %v575_v57 = vpop.permute.xlu1 %574 }
 0x113   : > { %v567_v3 = vpop.permute.xlu0 %566  ;;  %v822_v4 = vsel %vm804_vm11, %v803_v0, %v575_v57 }
 0x114   : > { %v814_v34 = vsel %vm804_vm11, %v795_v51, %v567_v3 }
 0x116   : > { %v610_v58 = vpop.permute.xlu1 %609 }
 0x117   : > { %v602_v46 = vpop.permute.xlu0 %601  ;;  %v841_v5 = vsel %vm823_vm12, %v822_v4, %v610_v58 }
 0x118   : > { %v833_v47 = vsel %vm823_vm12, %v814_v34, %v602_v46 }
 0x11a   : > { %v686_v18 = vpop.permute.xlu1 %685 }
 0x11b   : > { %v678_v14 = vpop.permute.xlu0 %677  ;;  %v860_v45 = vsel %vm842_vm13, %v841_v5, %v686_v18 }
 0x11c   : > { %v852_v43 = vsel %vm842_vm13, %v833_v47, %v678_v14 }
 0x11e   : > { %v727_v59 = vpop.permute.xlu1 %726 }
 0x11f   : > { %v879_v11 = vsel %vm861_vm14, %v860_v45, %v727_v59  ;;  %v719_v48 = vpop.permute.xlu0 %718 }
 0x120   : > { %v871_v10 = vsel %vm861_vm14, %v852_v43, %v719_v48  ;;  %1399 = vmatmul.mubr.msk.bf16.gmra.mrb[12].mxu1 %vm902_vm15, %v879_v11 }
 0x121   : > { %1383 = vmatmul.mubr.msk.bf16.gmra.mrb[16].mxu0 %vm902_vm15, %v871_v10 }
 0x177   : > { %v962_v38 = vpop.f32.mrb[0].mxu0 }
 0x178   : > { %v963_v28 = vadd.f32 %v2276_v63, %v962_v38  ;;  %v1368_v21 = vpop.f32.mrb[1].mxu0 }
 0x179   : > { %v965_v32 = vpop.f32.mrb[2].mxu0 }
 0x17a   : > { %vm1033_vm0 = vcmp.ge.f32.partialorder %v963_v28, 0.0  ;;  %v1051_v56 = vmul.f32 0.2, %v963_v28  ;;  %v966_v27 = vadd.f32 %v2276_v63, %v965_v32  ;;  %v1369_v52 = vpop.f32.mrb[3].mxu0 }
 0x17c   : > { %v1069_v39 = vsel %vm1033_vm0, %v963_v28, %v1051_v56  ;;  %vm1034_vm2 = vcmp.ge.f32.partialorder %v966_v27, 0.0  ;;  %v1052_v12 = vmul.f32 0.2, %v966_v27 }
 0x17d   : > { %v1333_v44 = vpack.c.bf16 %v1069_v39, %v1069_v39 }
 0x17e   : > { %v1070_v22 = vsel %vm1034_vm2, %v966_v27, %v1052_v12 }
 0x17f   : > { %1160 = vst.msk [vmem:[%s2283_s13] sm:$0xf] %vm1159_vm1, %v1333_v44  ;;  %v1334_v49 = vpack.c.bf16 %v1070_v22, %v1070_v22 }
 0x181   : > { %1161 = vst.msk [vmem:[%s2283_s13 + $0x4] sm:$0xf] %vm1159_vm1, %v1334_v49 }
 0x193   : > { %v1002_v25 = vpop.f32.mrb[0].mxu1 }
 0x194   : > { %v970_v16 = vpop.f32.mrb[4].mxu0  ;;  %v1003_v60 = vadd.f32 %v2276_v63, %v1002_v25  ;;  %v1388_v13 = vpop.f32.mrb[1].mxu1 }
 0x195   : > { %v971_v40 = vadd.f32 %v2276_v63, %v970_v16  ;;  %v1372_v42 = vpop.f32.mrb[5].mxu0  ;;  %v1005_v31 = vpop.f32.mrb[2].mxu1 }
 0x196   : > { %vm1043_vm3 = vcmp.ge.f32.partialorder %v1003_v60, 0.0  ;;  %v1061_v9 = vmul.f32 0.2, %v1003_v60  ;;  %v973_v55 = vpop.f32.mrb[6].mxu0  ;;  %v1006_v7 = vadd.f32 %v2276_v63, %v1005_v31  ;;  %v1389_v15 = vpop.f32.mrb[3].mxu1 }
 0x197   : > { %vm1035_vm4 = vcmp.ge.f32.partialorder %v971_v40, 0.0  ;;  %v1053_v1 = vmul.f32 0.2, %v971_v40  ;;  %v974_v17 = vadd.f32 %v2276_v63, %v973_v55  ;;  %v1373_v20 = vpop.f32.mrb[7].mxu0 }
 0x198   : > { %v1079_v23 = vsel %vm1043_vm3, %v1003_v60, %v1061_v9  ;;  %vm1044_vm5 = vcmp.ge.f32.partialorder %v1006_v7, 0.0  ;;  %v1062_v53 = vmul.f32 0.2, %v1006_v7 }
 0x199   : > { %v1071_v62 = vsel %vm1035_vm4, %v971_v40, %v1053_v1  ;;  %v1343_v8 = vpack.c.bf16 %v1079_v23, %v1079_v23  ;;  %vm1036_vm6 = vcmp.ge.f32.partialorder %v974_v17, 0.0  ;;  %v1054_v30 = vmul.f32 0.2, %v974_v17 }
 0x19a   : > { %v1335_v33 = vpack.c.bf16 %v1071_v62, %v1071_v62  ;;  %v1080_v37 = vsel %vm1044_vm5, %v1006_v7, %v1062_v53 }
 0x19b   : > { %1170 = vst.msk [vmem:[%s2283_s13 + $0x28] sm:$0xf] %vm1159_vm1, %v1343_v8  ;;  %v1072_v24 = vsel %vm1036_vm6, %v974_v17, %v1054_v30  ;;  %v1344_v26 = vpack.c.bf16 %v1080_v37, %v1080_v37 }
 0x19c   : > { %1162 = vst.msk [vmem:[%s2283_s13 + $0x8] sm:$0xf] %vm1159_vm1, %v1335_v33  ;;  %v1336_v41 = vpack.c.bf16 %v1072_v24, %v1072_v24 }
 0x19d   : > { %1171 = vst.msk [vmem:[%s2283_s13 + $0x2c] sm:$0xf] %vm1159_vm1, %v1344_v26 }
 0x19e   : > { %1163 = vst.msk [vmem:[%s2283_s13 + $0xc] sm:$0xf] %vm1159_vm1, %v1336_v41 }
 0x1b3   : > { %v1010_v36 = vpop.f32.mrb[4].mxu1 }
 0x1b4   : > { %v978_v61 = vpop.f32.mrb[8].mxu0  ;;  %v1011_v57 = vadd.f32 %v2276_v63, %v1010_v36  ;;  %v1392_v3 = vpop.f32.mrb[5].mxu1 }
 0x1b5   : > { %v979_v58 = vadd.f32 %v2276_v63, %v978_v61  ;;  %v1376_v46 = vpop.f32.mrb[9].mxu0  ;;  %v1013_v19 = vpop.f32.mrb[6].mxu1 }
 0x1b6   : > { %vm1045_vm7 = vcmp.ge.f32.partialorder %v1011_v57, 0.0  ;;  %v1063_v50 = vmul.f32 0.2, %v1011_v57  ;;  %v981_v2 = vpop.f32.mrb[10].mxu0  ;;  %v1014_v29 = vadd.f32 %v2276_v63, %v1013_v19  ;;  %v1393_v35 = vpop.f32.mrb[7].mxu1 }
 0x1b7   : > { %vm1037_vm8 = vcmp.ge.f32.partialorder %v979_v58, 0.0  ;;  %v1055_v6 = vmul.f32 0.2, %v979_v58  ;;  %v982_v18 = vadd.f32 %v2276_v63, %v981_v2  ;;  %v1377_v54 = vpop.f32.mrb[11].mxu0 }
 0x1b8   : > { %v1081_v0 = vsel %vm1045_vm7, %v1011_v57, %v1063_v50  ;;  %vm1046_vm9 = vcmp.ge.f32.partialorder %v1014_v29, 0.0  ;;  %v1064_v14 = vmul.f32 0.2, %v1014_v29 }
 0x1b9   : > { %v1073_v51 = vsel %vm1037_vm8, %v979_v58, %v1055_v6  ;;  %v1345_v4 = vpack.c.bf16 %v1081_v0, %v1081_v0  ;;  %vm1038_vm10 = vcmp.ge.f32.partialorder %v982_v18, 0.0  ;;  %v1056_v34 = vmul.f32 0.2, %v982_v18 }
 0x1ba   : > { %v1337_v5 = vpack.c.bf16 %v1073_v51, %v1073_v51  ;;  %v1082_v47 = vsel %vm1046_vm9, %v1014_v29, %v1064_v14 }
 0x1bb   : > { %1172 = vst.msk [vmem:[%s2283_s13 + $0x30] sm:$0xf] %vm1159_vm1, %v1345_v4  ;;  %v1074_v45 = vsel %vm1038_vm10, %v982_v18, %v1056_v34  ;;  %v1346_v59 = vpack.c.bf16 %v1082_v47, %v1082_v47 }
 0x1bc   : > { %1164 = vst.msk [vmem:[%s2283_s13 + $0x10] sm:$0xf] %vm1159_vm1, %v1337_v5  ;;  %v1338_v43 = vpack.c.bf16 %v1074_v45, %v1074_v45 }
 0x1bd   : > { %1173 = vst.msk [vmem:[%s2283_s13 + $0x34] sm:$0xf] %vm1159_vm1, %v1346_v59 }
 0x1be   : > { %1165 = vst.msk [vmem:[%s2283_s13 + $0x14] sm:$0xf] %vm1159_vm1, %v1338_v43 }
 0x1d3   : > { %v1018_v11 = vpop.f32.mrb[8].mxu1 }
 0x1d4   : > { %v986_v48 = vpop.f32.mrb[12].mxu0  ;;  %v1019_v10 = vadd.f32 %v2276_v63, %v1018_v11  ;;  %v1396_v38 = vpop.f32.mrb[9].mxu1 }
 0x1d5   : > { %v987_v28 = vadd.f32 %v2276_v63, %v986_v48  ;;  %v1380_v21 = vpop.f32.mrb[13].mxu0  ;;  %v1021_v32 = vpop.f32.mrb[10].mxu1 }
 0x1d6   : > { %vm1047_vm11 = vcmp.ge.f32.partialorder %v1019_v10, 0.0  ;;  %v1065_v56 = vmul.f32 0.2, %v1019_v10  ;;  %v989_v27 = vpop.f32.mrb[14].mxu0  ;;  %v1022_v52 = vadd.f32 %v2276_v63, %v1021_v32  ;;  %v1397_v39 = vpop.f32.mrb[11].mxu1 }
 0x1d7   : > { %vm1039_vm12 = vcmp.ge.f32.partialorder %v987_v28, 0.0  ;;  %v1057_v12 = vmul.f32 0.2, %v987_v28  ;;  %v990_v44 = vadd.f32 %v2276_v63, %v989_v27  ;;  %v1381_v22 = vpop.f32.mrb[15].mxu0 }
 0x1d8   : > { %v1083_v49 = vsel %vm1047_vm11, %v1019_v10, %v1065_v56  ;;  %vm1048_vm13 = vcmp.ge.f32.partialorder %v1022_v52, 0.0  ;;  %v1066_v25 = vmul.f32 0.2, %v1022_v52 }
 0x1d9   : > { %v1075_v16 = vsel %vm1039_vm12, %v987_v28, %v1057_v12  ;;  %v1347_v60 = vpack.c.bf16 %v1083_v49, %v1083_v49  ;;  %vm1040_vm14 = vcmp.ge.f32.partialorder %v990_v44, 0.0  ;;  %v1058_v13 = vmul.f32 0.2, %v990_v44 }
 0x1da   : > { %v1339_v40 = vpack.c.bf16 %v1075_v16, %v1075_v16  ;;  %v1084_v42 = vsel %vm1048_vm13, %v1022_v52, %v1066_v25 }
 0x1db   : > { %1174 = vst.msk [vmem:[%s2283_s13 + $0x38] sm:$0xf] %vm1159_vm1, %v1347_v60  ;;  %v1076_v31 = vsel %vm1040_vm14, %v990_v44, %v1058_v13  ;;  %v1348_v9 = vpack.c.bf16 %v1084_v42, %v1084_v42 }
 0x1dc   : > { %1166 = vst.msk [vmem:[%s2283_s13 + $0x18] sm:$0xf] %vm1159_vm1, %v1339_v40  ;;  %v1340_v55 = vpack.c.bf16 %v1076_v31, %v1076_v31 }
 0x1dd   : > { %1175 = vst.msk [vmem:[%s2283_s13 + $0x3c] sm:$0xf] %vm1159_vm1, %v1348_v9 }
 0x1de   : > { %1167 = vst.msk [vmem:[%s2283_s13 + $0x1c] sm:$0xf] %vm1159_vm1, %v1340_v55 }
 0x1f3   : > { %v1026_v7 = vpop.f32.mrb[12].mxu1 }
 0x1f4   : > { %v994_v15 = vpop.f32.mrb[16].mxu0  ;;  %v1027_v1 = vadd.f32 %v2276_v63, %v1026_v7  ;;  %v1400_v17 = vpop.f32.mrb[13].mxu1 }
 0x1f5   : > { %v995_v20 = vadd.f32 %v2276_v63, %v994_v15  ;;  %v1384_v23 = vpop.f32.mrb[17].mxu0  ;;  %v1029_v53 = vpop.f32.mrb[14].mxu1 }
 0x1f6   : > { %vm1049_vm15 = vcmp.ge.f32.partialorder %v1027_v1, 0.0  ;;  %v1067_v62 = vmul.f32 0.2, %v1027_v1  ;;  %v997_v8 = vpop.f32.mrb[18].mxu0  ;;  %v1030_v30 = vadd.f32 %v2276_v63, %v1029_v53  ;;  %v1401_v33 = vpop.f32.mrb[15].mxu1 }
 0x1f7   : > { %vm1041_vm0 = vcmp.ge.f32.partialorder %v995_v20, 0.0  ;;  %v1059_v37 = vmul.f32 0.2, %v995_v20  ;;  %v998_v24 = vadd.f32 %v2276_v63, %v997_v8  ;;  %v1385_v26 = vpop.f32.mrb[19].mxu0 }
 0x1f8   : > { %v1085_v41 = vsel %vm1049_vm15, %v1027_v1, %v1067_v62  ;;  %vm1050_vm2 = vcmp.ge.f32.partialorder %v1030_v30, 0.0  ;;  %v1068_v36 = vmul.f32 0.2, %v1030_v30 }
 0x1f9   : > { %v1077_v61 = vsel %vm1041_vm0, %v995_v20, %v1059_v37  ;;  %v1349_v57 = vpack.c.bf16 %v1085_v41, %v1085_v41  ;;  %vm1042_vm3 = vcmp.ge.f32.partialorder %v998_v24, 0.0  ;;  %v1060_v3 = vmul.f32 0.2, %v998_v24 }
 0x1fa   : > { %v1341_v58 = vpack.c.bf16 %v1077_v61, %v1077_v61  ;;  %v1086_v46 = vsel %vm1050_vm2, %v1030_v30, %v1068_v36 }
 0x1fb   : > { %1176 = vst.msk [vmem:[%s2283_s13 + $0x40] sm:$0xf] %vm1159_vm1, %v1349_v57  ;;  %v1078_v19 = vsel %vm1042_vm3, %v998_v24, %v1060_v3  ;;  %v1350_v50 = vpack.c.bf16 %v1086_v46, %v1086_v46 }
 0x1fc   : > { %1168 = vst.msk [vmem:[%s2283_s13 + $0x20] sm:$0xf] %vm1159_vm1, %v1341_v58  ;;  %v1342_v2 = vpack.c.bf16 %v1078_v19, %v1078_v19 }
 0x1fd   : > { %1177 = vst.msk [vmem:[%s2283_s13 + $0x44] sm:$0xf] %vm1159_vm1, %v1350_v50 }
 0x1fe   : > { %1169 = vst.msk [vmem:[%s2283_s13 + $0x24] sm:$0xf] %vm1159_vm1, %v1342_v2 }
 0x1ff PF: > { %s13_s16 = sadd.s32 1, %s1522_s16   ;;  %s2402_s12 = smov %s1514_s14 }
 0x200   : > { %p10_p7 = scmp.ge.s32.totalorder %s13_s16, 6   ;;  %s2403_s13 = smov %s1518_s15 }
 0x201   : > { %s2404_s14 = smov %s2407_s17  ;;  %s2405_s15 = smov %s2411_s18 }
 0x202   :  { %12 = sbr.rel (!%p10_p7) target bundleno = 3 (0x3), region = 62 }

</bundles_post_ra>
